<compile_context>
chip_gen: v7x
topology: tpu7x:2x2x1
jax: 0.10.0
libtpu: 0.0.40
codegen_flags: <defaults>
</compile_context>

<pallas_src>
import math

import jax
import jax.numpy as jnp
from jax.experimental import pallas as pl
from jax.experimental.pallas import tpu as pltpu

LOG_SIG_MAX = 2.0
LOG_SIG_MIN = -20.0

LANE = 128
SUBLANE = 8


def _round_up(x, m):
    return ((x + m - 1) // m) * m


def gaussian_policy_kernel(state_ref, w1_ref, b1_ref, w2_ref, b2_ref,
                           wh_ref, bh_ref, lo_ref, hi_ref, out_ref):
    """One batch tile: two hidden layers + fused (mean || log_std) head.

    out_ref is a lane-dense (TB, slab) tile; the per-lane lo/hi vectors clamp
    only the log_std lanes (mean lanes have -inf/+inf bounds).
    """
    wdt = w1_ref.dtype  # f32 by default; bf16 if weight_dtype=bfloat16

    # hidden layer 1 + ReLU (f32 accumulate, f32 elementwise tail)
    x = jnp.dot(state_ref[...].astype(wdt), w1_ref[...],
                preferred_element_type=jnp.float32)
    x = jnp.maximum(x + b1_ref[...], 0.0)

    # hidden layer 2 + ReLU
    x = jnp.dot(x.astype(wdt), w2_ref[...],
                preferred_element_type=jnp.float32)
    x = jnp.maximum(x + b2_ref[...], 0.0)

    # fused head: one MXU pass produces [mean | log_std] side by side
    h = jnp.dot(x.astype(wdt), wh_ref[...],
                preferred_element_type=jnp.float32) + bh_ref[...]

    # per-lane clamp: identity on mean lanes, [-20, 2] on log_std lanes
    out_ref[...] = jnp.clip(h, lo_ref[...], hi_ref[...]).astype(out_ref.dtype)


def pack_params(params, *, weight_dtype=jnp.float32):
    """Pad / fuse / cast the raw (in, out)-layout params ONCE.

    Call this at init (or whenever the torch weights change) and pass the
    returned dict to gaussian_policy_forward on every call.
    """
    f32 = jnp.float32
    num_inputs, hidden_dim = params["w1"].shape
    num_actions = params["wm"].shape[1]

    h_pad = _round_up(hidden_dim, LANE)
    # Pack mean||log_std into one 128-lane slab when the action dim allows it.
    half = 64 if num_actions <= 64 else _round_up(num_actions, LANE)
    slab = 2 * half

    w1 = jnp.pad(params["w1"], ((0, 0), (0, h_pad - hidden_dim))
                 ).astype(weight_dtype)                                  # (in, h_pad)
    b1 = jnp.pad(params["b1"], ((0, 0), (0, h_pad - hidden_dim))).astype(f32)
    w2 = jnp.pad(params["w2"], ((0, h_pad - hidden_dim), (0, h_pad - hidden_dim))
                 ).astype(weight_dtype)                                  # (h_pad, h_pad)
    b2 = jnp.pad(params["b2"], ((0, 0), (0, h_pad - hidden_dim))).astype(f32)

    wm = jnp.pad(params["wm"], ((0, h_pad - hidden_dim), (0, half - num_actions)))
    ws = jnp.pad(params["ws"], ((0, h_pad - hidden_dim), (0, half - num_actions)))
    wh = jnp.concatenate([wm, ws], axis=1).astype(weight_dtype)          # (h_pad, slab)
    bm = jnp.pad(params["bm"], ((0, 0), (0, half - num_actions)))
    bs = jnp.pad(params["bs"], ((0, 0), (0, half - num_actions)))
    bh = jnp.concatenate([bm, bs], axis=1).astype(f32)                   # (1, slab)

    lane = jnp.arange(slab, dtype=jnp.int32)[None, :]
    lo = jnp.where(lane < half, -jnp.inf, LOG_SIG_MIN).astype(f32)       # (1, slab)
    hi = jnp.where(lane < half, jnp.inf, LOG_SIG_MAX).astype(f32)        # (1, slab)

    return {
        "w1": w1, "b1": b1, "w2": w2, "b2": b2, "wh": wh, "bh": bh,
        "lo": lo, "hi": hi,
        "num_inputs": num_inputs, "hidden_dim": hidden_dim,
        "num_actions": num_actions, "h_pad": h_pad, "half": half, "slab": slab,
    }


def gaussian_policy_forward(state, packed, *, tb=1024, out_dtype=jnp.float32):
    """state: (B, num_inputs). packed: output of pack_params.

    Returns (mean, log_std), each (B, num_actions) in out_dtype.
    """
    B, num_inputs = state.shape
    assert num_inputs == packed["num_inputs"]
    h_pad = packed["h_pad"]
    half = packed["half"]
    slab = packed["slab"]
    num_actions = packed["num_actions"]

    # Batch tile: multiple of 8 sublanes; don't exceed the (rounded) batch;
    # for large B keep >= 2 grid steps so both v7x TensorCores get work.
    tb = min(tb, _round_up(B, SUBLANE))
    tb = min(tb, max(SUBLANE, _round_up(pl.cdiv(B, 2), LANE)))
    tb = _round_up(tb, SUBLANE)

    grid = (pl.cdiv(B, tb),)

    # Tiled operands: state + output slab march along the batch axis (partial
    # edge blocks are masked by Pallas, so no batch padding / copy is needed).
    # Weights/biases/bounds: constant index_map -> VMEM-resident across grid.
    in_specs = [
        pl.BlockSpec((tb, num_inputs), lambda i: (i, 0)),       # state tile (full feat dim)
        pl.BlockSpec((num_inputs, h_pad), lambda i: (0, 0)),    # w1
        pl.BlockSpec((1, h_pad), lambda i: (0, 0)),             # b1
        pl.BlockSpec((h_pad, h_pad), lambda i: (0, 0)),         # w2
        pl.BlockSpec((1, h_pad), lambda i: (0, 0)),             # b2
        pl.BlockSpec((h_pad, slab), lambda i: (0, 0)),          # wh (fused head)
        pl.BlockSpec((1, slab), lambda i: (0, 0)),              # bh (fused head)
        pl.BlockSpec((1, slab), lambda i: (0, 0)),              # lo (clamp bounds)
        pl.BlockSpec((1, slab), lambda i: (0, 0)),              # hi (clamp bounds)
    ]
    out_specs = pl.BlockSpec((tb, slab), lambda i: (i, 0))
    out_shape = jax.ShapeDtypeStruct((B, slab), out_dtype)

    # Advisory cost hint for XLA's scheduler around the custom call.
    weight_keys = ("w1", "b1", "w2", "b2", "wh", "bh", "lo", "hi")
    weight_bytes = sum(int(packed[k].size) * packed[k].dtype.itemsize
                       for k in weight_keys)
    bytes_accessed = (int(state.size) * state.dtype.itemsize
                      + weight_bytes
                      + B * slab * jnp.dtype(out_dtype).itemsize)
    flops = 2 * B * (num_inputs * h_pad + h_pad * h_pad + h_pad * slab)
    cost = pl.CostEstimate(flops=flops, transcendentals=0,
                           bytes_accessed=bytes_accessed)

    out = pl.pallas_call(
        gaussian_policy_kernel,
        out_shape=out_shape,
        grid=grid,
        in_specs=in_specs,
        out_specs=out_specs,
        compiler_params=pltpu.CompilerParams(
            dimension_semantics=("parallel",),
        ),
        cost_estimate=cost,
    )(state, packed["w1"], packed["b1"], packed["w2"], packed["b2"],
      packed["wh"], packed["bh"], packed["lo"], packed["hi"])

    mean = out[:, :num_actions]
    log_std = out[:, half:half + num_actions]
    return mean, log_std


def xavier_uniform(key, in_features, out_features, gain=1.0):
    # matches torch.nn.init.xavier_uniform_ (returned as (in, out) i.e. W.T)
    limit = gain * math.sqrt(6.0 / (in_features + out_features))
    return jax.random.uniform(key, (in_features, out_features),
                              dtype=jnp.float32, minval=-limit, maxval=limit)


def init_params(key, num_inputs, num_actions, hidden_dim):
    k1, k2, k3, k4 = jax.random.split(key, 4)
    return {
        "w1": xavier_uniform(k1, num_inputs, hidden_dim),
        "b1": jnp.zeros((1, hidden_dim), jnp.float32),
        "w2": xavier_uniform(k2, hidden_dim, hidden_dim),
        "b2": jnp.zeros((1, hidden_dim), jnp.float32),
        "wm": xavier_uniform(k3, hidden_dim, num_actions),
        "bm": jnp.zeros((1, num_actions), jnp.float32),
        "ws": xavier_uniform(k4, hidden_dim, num_actions),
        "bs": jnp.zeros((1, num_actions), jnp.float32),
    }


def _reference_forward(state, params):
    x = jnp.maximum(state @ params["w1"] + params["b1"], 0.0)
    x = jnp.maximum(x @ params["w2"] + params["b2"], 0.0)
    mean = x @ params["wm"] + params["bm"]
    log_std = jnp.clip(x @ params["ws"] + params["bs"], LOG_SIG_MIN, LOG_SIG_MAX)
    return mean, log_std


if __name__ == "__main__":
    # Small shapes consistent with the module's forward: state is (B, num_inputs).
    batch = 8
    num_inputs = 16
    num_actions = 8
    hidden_dim = 32

    key = jax.random.PRNGKey(0)
    pkey, skey = jax.random.split(key)

    params = init_params(pkey, num_inputs, num_actions, hidden_dim)
    packed = pack_params(params)                       # pack ONCE, reuse per call
    state = jax.random.normal(skey, (batch, num_inputs), dtype=jnp.float32)

    mean, log_std = gaussian_policy_forward(state, packed)
    jax.block_until_ready((mean, log_std))

    mean_ref, log_std_ref = _reference_forward(state, params)
    assert mean.shape == (batch, num_actions)
    assert log_std.shape == (batch, num_actions)
    assert jnp.allclose(mean, mean_ref, atol=1e-5), jnp.max(jnp.abs(mean - mean_ref))
    assert jnp.allclose(log_std, log_std_ref, atol=1e-5), jnp.max(jnp.abs(log_std - log_std_ref))
    assert bool(jnp.all(log_std <= LOG_SIG_MAX)) and bool(jnp.all(log_std >= LOG_SIG_MIN))

    # Multi-tile path: B not a multiple of tb -> partial edge block, 2 grid steps.
    big_batch = 1000
    big_state = jax.random.normal(jax.random.PRNGKey(1), (big_batch, num_inputs),
                                  dtype=jnp.float32)
    bm_out, bl_out = gaussian_policy_forward(big_state, packed, tb=1024)
    jax.block_until_ready((bm_out, bl_out))
    bm_ref, bl_ref = _reference_forward(big_state, params)
    assert bm_out.shape == (big_batch, num_actions)
    assert jnp.allclose(bm_out, bm_ref, atol=1e-5)
    assert jnp.allclose(bl_out, bl_ref, atol=1e-5)

    # bf16-weight path (f32 accumulation + f32 elementwise tail; works on
    # v5e/v6e/v7x -- only the matmul operands are bf16).  Relaxed tolerance.
    packed_bf16 = pack_params(params, weight_dtype=jnp.bfloat16)
    bm16, bl16 = gaussian_policy_forward(big_state, packed_bf16, tb=1024)
    jax.block_until_ready((bm16, bl16))
    assert jnp.allclose(bm16, bm_ref, atol=1e-1)
    assert jnp.allclose(bl16, bl_ref, atol=1e-1)
    assert bool(jnp.all(jnp.isfinite(bm16)))

    # TODO(synk): `sample()` (Normal.rsample / tanh-squash log-prob) is stochastic
    # inference glue, not part of forward(); left out of the kernel.
    print("KERNEL_OK")
</pallas_src>

<mosaic_0001>
module attributes {stable_mosaic.version = 11 : i64} {
  func.func @gaussian_policy_kernel(%arg0: i32, %arg1: memref<8x16xf32, #tpu.memory_space<vmem>>, %arg2: memref<16x128xf32, #tpu.memory_space<vmem>>, %arg3: memref<1x128xf32, #tpu.memory_space<vmem>>, %arg4: memref<128x128xf32, #tpu.memory_space<vmem>>, %arg5: memref<1x128xf32, #tpu.memory_space<vmem>>, %arg6: memref<128x128xf32, #tpu.memory_space<vmem>>, %arg7: memref<1x128xf32, #tpu.memory_space<vmem>>, %arg8: memref<1x128xf32, #tpu.memory_space<vmem>>, %arg9: memref<1x128xf32, #tpu.memory_space<vmem>>, %arg10: memref<8x128xf32, #tpu.memory_space<vmem>>) attributes {dimension_semantics = [#tpu.dimension_semantics<parallel>], iteration_bounds = array<i64: 1>, scalar_prefetch = 0 : i64, scratch_operands = 0 : i64, tpu.core_type = #tpu.core_type<tc>, window_params = [{transform_indices = @transform_0, window_bounds = array<i64: 8, 16>}, {pipeline_mode = #tpu.pipeline_mode<synchronous>, transform_indices = @transform_1, window_bounds = array<i64: 16, 128>}, {pipeline_mode = #tpu.pipeline_mode<synchronous>, transform_indices = @transform_2, window_bounds = array<i64: 1, 128>}, {pipeline_mode = #tpu.pipeline_mode<synchronous>, transform_indices = @transform_3, window_bounds = array<i64: 128, 128>}, {pipeline_mode = #tpu.pipeline_mode<synchronous>, transform_indices = @transform_4, window_bounds = array<i64: 1, 128>}, {pipeline_mode = #tpu.pipeline_mode<synchronous>, transform_indices = @transform_5, window_bounds = array<i64: 128, 128>}, {pipeline_mode = #tpu.pipeline_mode<synchronous>, transform_indices = @transform_6, window_bounds = array<i64: 1, 128>}, {pipeline_mode = #tpu.pipeline_mode<synchronous>, transform_indices = @transform_7, window_bounds = array<i64: 1, 128>}, {pipeline_mode = #tpu.pipeline_mode<synchronous>, transform_indices = @transform_8, window_bounds = array<i64: 1, 128>}, {transform_indices = @transform_9, window_bounds = array<i64: 8, 128>}]} {
    %c0 = arith.constant 0 : index
    %c0_0 = arith.constant 0 : index
    %0 = vector.load %arg1[%c0, %c0_0] : memref<8x16xf32, #tpu.memory_space<vmem>>, vector<8x16xf32>
    %c0_1 = arith.constant 0 : index
    %c0_2 = arith.constant 0 : index
    %1 = vector.load %arg2[%c0_1, %c0_2] : memref<16x128xf32, #tpu.memory_space<vmem>>, vector<16x128xf32>
    %cst = arith.constant dense<0.000000e+00> : vector<8x128xf32>
    %2 = tpu.matmul %0, %1, %cst {dimension_numbers = #tpu.dot_dimension_numbers<[1], [0], [0], [1], [0, 0, 1, 1], [], []>} : vector<8x16xf32>, vector<16x128xf32>, vector<8x128xf32> -> vector<8x128xf32>
    %c0_3 = arith.constant 0 : index
    %c0_4 = arith.constant 0 : index
    %3 = vector.load %arg3[%c0_3, %c0_4] : memref<1x128xf32, #tpu.memory_space<vmem>>, vector<1x128xf32>
    %4 = vector.broadcast %3 : vector<1x128xf32> to vector<8x128xf32>
    %5 = arith.addf %2, %4 : vector<8x128xf32>
    %cst_5 = arith.constant 0.000000e+00 : f32
    %6 = vector.broadcast %cst_5 : f32 to vector<8x128xf32>
    %7 = arith.maximumf %5, %6 : vector<8x128xf32>
    %c0_6 = arith.constant 0 : index
    %c0_7 = arith.constant 0 : index
    %8 = vector.load %arg4[%c0_6, %c0_7] : memref<128x128xf32, #tpu.memory_space<vmem>>, vector<128x128xf32>
    %cst_8 = arith.constant dense<0.000000e+00> : vector<8x128xf32>
    %9 = tpu.matmul %7, %8, %cst_8 {dimension_numbers = #tpu.dot_dimension_numbers<[1], [0], [0], [1], [0, 0, 1, 1], [], []>} : vector<8x128xf32>, vector<128x128xf32>, vector<8x128xf32> -> vector<8x128xf32>
    %c0_9 = arith.constant 0 : index
    %c0_10 = arith.constant 0 : index
    %10 = vector.load %arg5[%c0_9, %c0_10] : memref<1x128xf32, #tpu.memory_space<vmem>>, vector<1x128xf32>
    %11 = vector.broadcast %10 : vector<1x128xf32> to vector<8x128xf32>
    %12 = arith.addf %9, %11 : vector<8x128xf32>
    %cst_11 = arith.constant 0.000000e+00 : f32
    %13 = vector.broadcast %cst_11 : f32 to vector<8x128xf32>
    %14 = arith.maximumf %12, %13 : vector<8x128xf32>
    %c0_12 = arith.constant 0 : index
    %c0_13 = arith.constant 0 : index
    %15 = vector.load %arg6[%c0_12, %c0_13] : memref<128x128xf32, #tpu.memory_space<vmem>>, vector<128x128xf32>
    %cst_14 = arith.constant dense<0.000000e+00> : vector<8x128xf32>
    %16 = tpu.matmul %14, %15, %cst_14 {dimension_numbers = #tpu.dot_dimension_numbers<[1], [0], [0], [1], [0, 0, 1, 1], [], []>} : vector<8x128xf32>, vector<128x128xf32>, vector<8x128xf32> -> vector<8x128xf32>
    %c0_15 = arith.constant 0 : index
    %c0_16 = arith.constant 0 : index
    %17 = vector.load %arg7[%c0_15, %c0_16] : memref<1x128xf32, #tpu.memory_space<vmem>>, vector<1x128xf32>
    %18 = vector.broadcast %17 : vector<1x128xf32> to vector<8x128xf32>
    %19 = arith.addf %16, %18 : vector<8x128xf32>
    %c0_17 = arith.constant 0 : index
    %c0_18 = arith.constant 0 : index
    %20 = vector.load %arg8[%c0_17, %c0_18] : memref<1x128xf32, #tpu.memory_space<vmem>>, vector<1x128xf32>
    %c0_19 = arith.constant 0 : index
    %c0_20 = arith.constant 0 : index
    %21 = vector.load %arg9[%c0_19, %c0_20] : memref<1x128xf32, #tpu.memory_space<vmem>>, vector<1x128xf32>
    %22 = vector.broadcast %20 : vector<1x128xf32> to vector<8x128xf32>
    %23 = arith.maximumf %22, %19 : vector<8x128xf32>
    %24 = vector.broadcast %21 : vector<1x128xf32> to vector<8x128xf32>
    %25 = arith.minimumf %24, %23 : vector<8x128xf32>
    %c0_21 = arith.constant 0 : index
    %c0_22 = arith.constant 0 : index
    %26 = vector.load %arg10[%c0_21, %c0_22] : memref<8x128xf32, #tpu.memory_space<vmem>>, vector<8x128xf32>
    tpu.vector_store %arg10[%c0_21, %c0_22], %25 {strides = array<i32>} : memref<8x128xf32, #tpu.memory_space<vmem>>, vector<8x128xf32>,
    return
  }
  func.func @transform_0(%arg0: i32) -> (i32, i32) {
    %c0_i32 = arith.constant 0 : i32
    %c0_i32_0 = arith.constant 0 : i32
    return %arg0, %c0_i32 : i32, i32
  }
  func.func @transform_1(%arg0: i32) -> (i32, i32) {
    %c0_i32 = arith.constant 0 : i32
    %c0_i32_0 = arith.constant 0 : i32
    %c0_i32_1 = arith.constant 0 : i32
    return %c0_i32, %c0_i32_0 : i32, i32
  }
  func.func @transform_2(%arg0: i32) -> (i32, i32) {
    %c0_i32 = arith.constant 0 : i32
    %c0_i32_0 = arith.constant 0 : i32
    %c0_i32_1 = arith.constant 0 : i32
    return %c0_i32, %c0_i32_0 : i32, i32
  }
  func.func @transform_3(%arg0: i32) -> (i32, i32) {
    %c0_i32 = arith.constant 0 : i32
    %c0_i32_0 = arith.constant 0 : i32
    %c0_i32_1 = arith.constant 0 : i32
    return %c0_i32, %c0_i32_0 : i32, i32
  }
  func.func @transform_4(%arg0: i32) -> (i32, i32) {
    %c0_i32 = arith.constant 0 : i32
    %c0_i32_0 = arith.constant 0 : i32
    %c0_i32_1 = arith.constant 0 : i32
    return %c0_i32, %c0_i32_0 : i32, i32
  }
  func.func @transform_5(%arg0: i32) -> (i32, i32) {
    %c0_i32 = arith.constant 0 : i32
    %c0_i32_0 = arith.constant 0 : i32
    %c0_i32_1 = arith.constant 0 : i32
    return %c0_i32, %c0_i32_0 : i32, i32
  }
  func.func @transform_6(%arg0: i32) -> (i32, i32) {
    %c0_i32 = arith.constant 0 : i32
    %c0_i32_0 = arith.constant 0 : i32
    %c0_i32_1 = arith.constant 0 : i32
    return %c0_i32, %c0_i32_0 : i32, i32
  }
  func.func @transform_7(%arg0: i32) -> (i32, i32) {
    %c0_i32 = arith.constant 0 : i32
    %c0_i32_0 = arith.constant 0 : i32
    %c0_i32_1 = arith.constant 0 : i32
    return %c0_i32, %c0_i32_0 : i32, i32
  }
  func.func @transform_8(%arg0: i32) -> (i32, i32) {
    %c0_i32 = arith.constant 0 : i32
    %c0_i32_0 = arith.constant 0 : i32
    %c0_i32_1 = arith.constant 0 : i32
    return %c0_i32, %c0_i32_0 : i32, i32
  }
  func.func @transform_9(%arg0: i32) -> (i32, i32) {
    %c0_i32 = arith.constant 0 : i32
    %c0_i32_0 = arith.constant 0 : i32
    return %arg0, %c0_i32 : i32, i32
  }
}

</mosaic_0001>

<bundles_post_ra>
// kernel: tpu_custom_call.1
= control target key start
LH: loop header
LB: loop body
LE: loop exit
PB: predicated region body
PF: predicated region fallthrough
CT: control target
= control target key end

     0   :  { %14 = vsyncpa [#allocation3], 0  ;;  %s855_s0 = inlined_call_operand.hbm [shape: f32[8,16], index: 0, kind: input, shape index: {}]   ;;  %s856_s1 = inlined_call_operand.hbm [shape: f32[16,128], index: 1, kind: input, shape index: {}]   ;;  %s857_s2 = inlined_call_operand.vmem [shape: f32[1,128], index: 2, kind: input, shape index: {}]   ;;  %s858_s3 = inlined_call_operand.hbm [shape: f32[128,128], index: 3, kind: input, shape index: {}]   ;;  %s859_s4 = inlined_call_operand.vmem [shape: f32[1,128], index: 4, kind: input, shape index: {}]   ;;  %s860_s5 = inlined_call_operand.hbm [shape: f32[128,128], index: 5, kind: input, shape index: {}]   ;;  %s861_s6 = inlined_call_operand.vmem [shape: f32[1,128], index: 6, kind: input, shape index: {}]   ;;  %s862_s7 = inlined_call_operand.vmem [shape: f32[1,128], index: 7, kind: input, shape index: {}]   ;;  %s863_s8 = inlined_call_operand.vmem [shape: f32[1,128], index: 8, kind: input, shape index: {}]   ;;  %s864_s9 = inlined_call_operand.hbm [shape: f32[8,128], index: 9, kind: output, shape index: {}]  }
   0x1   :  { %15 = vsyncpa [#allocation6], 0 }
   0x2   :  { %16 = vsyncpa [#allocation9], 0 }
   0x3   :  { %17 = vsyncpa [#allocation4], 0  ;;  %s691_s30 = smov [#allocation5]   ;;  %s573_s13 = scalar_lea.hbm %s856_s1, 256 }
   0x4   :  { %s33_s10 = sshll.u32 %s691_s30, 4  ;;  %p574_p0 = scmp.ne.s32.totalorder %s856_s1, %s573_s13  ;;  %s34_s10 = int_to_ptr.vmem [resolvable:$true] %s33_s10 }
   0x5   :  { %p577_p1 = scmp.lt.u32.totalorder %s573_s13, %s856_s1 }
   0x7   :  { %p579_p2 = pnand %p577_p1, %p574_p0 }
   0x9   :  { %582 = shalt.err (!%p579_p2)
}
   0xa   :  { %s583_s18 = scalar_lea.vmem %s34_s10, 256  ;;  %p588_p4 = scmp.lt.s32.totalorder %s34_s10, %s34_s10 }
   0xb   :  { %p584_p3 = scmp.ne.s32.totalorder %s34_s10, %s583_s18  ;;  %p589_p5 = scmp.lt.s32.totalorder %s583_s18, %s583_s18 }
   0xd   :  { %p590_p6 = por %p589_p5, %p588_p4 }
   0xf   :  { %p591_p7 = pnand %p590_p6, %p584_p3 }
  0x11   :  { %594 = shalt.err (!%p591_p7)
}
  0x12   :  { %s692_s19 = smov 128   ;;  %s693_s20 = smov 8  }
  0x13   :  { %39 = dma.hbm_to_vmem [thread:$0]  %s856_s1, 256, %s34_s10, [#allocation6], %s692_s19, %s692_s19, %s693_s20  }
  0x14   :  { %s694_s23 = smov [#allocation2]   ;;  %s695_s25 = smov [#allocation7]  }
  0x15   :  { %s24_s24 = sshll.u32 %s694_s23, 4  ;;  %s47_s26 = sshll.u32 %s695_s25, 4  ;;  %s25_s24 = int_to_ptr.vmem [resolvable:$true] %s24_s24  ;;  %s48_s26 = int_to_ptr.vmem [resolvable:$true] %s47_s26 }
  0x16   :  { %s595_s29 = scalar_lea.hbm %s855_s0, 128 }
  0x17   :  { %p596_p8 = scmp.ne.s32.totalorder %s855_s0, %s595_s29  ;;  %p599_p9 = scmp.lt.u32.totalorder %s595_s29, %s855_s0 }
  0x19   :  { %p601_p10 = pnand %p599_p9, %p596_p8 }
  0x1b   :  { %604 = shalt.err (!%p601_p10)
}
  0x1c   :  { %s605_s1 = scalar_lea.vmem %s25_s24, 128  ;;  %p610_p12 = scmp.lt.s32.totalorder %s25_s24, %s25_s24 }
  0x1d   :  { %p606_p11 = scmp.ne.s32.totalorder %s25_s24, %s605_s1  ;;  %p611_p13 = scmp.lt.s32.totalorder %s605_s1, %s605_s1 }
  0x1f   :  { %p612_p0 = por %p611_p13, %p610_p12 }
  0x21   :  { %p613_p1 = pnand %p612_p0, %p606_p11 }
  0x23   :  { %616 = shalt.err (!%p613_p1)
}
  0x24   :  { %27 = dma.hbm_to_vmem [thread:$0]  %s855_s0, 128, %s25_s24, [#allocation3]  }
  0x25   :  { %s617_s17 = scalar_lea.hbm %s858_s3, 2048 }
  0x26   :  { %p618_p2 = scmp.ne.s32.totalorder %s858_s3, %s617_s17  ;;  %p621_p3 = scmp.lt.u32.totalorder %s617_s17, %s858_s3 }
  0x28   :  { %p623_p4 = pnand %p621_p3, %p618_p2 }
  0x2a   :  { %626 = shalt.err (!%p623_p4)
}
  0x2b   :  { %s627_s25 = scalar_lea.vmem %s48_s26, 2048  ;;  %p632_p6 = scmp.lt.s32.totalorder %s48_s26, %s48_s26 }
  0x2c   :  { %p628_p5 = scmp.ne.s32.totalorder %s48_s26, %s627_s25  ;;  %p633_p7 = scmp.lt.s32.totalorder %s627_s25, %s627_s25 }
  0x2e   :  { %p634_p8 = por %p633_p7, %p632_p6 }
  0x30   :  { %p635_p9 = pnand %p634_p8, %p628_p5 }
  0x32   :  { %638 = shalt.err (!%p635_p9)
}
  0x33   :  { %53 = dma.hbm_to_vmem [thread:$0]  %s858_s3, 2048, %s48_s26, [#allocation6], %s692_s19, %s692_s19, %s693_s20  }
  0x34   :  { %s696_s27 = smov [#allocation8]   ;;  %s639_s11 = scalar_lea.hbm %s860_s5, 2048 }
  0x35   :  { %s61_s28 = sshll.u32 %s696_s27, 4  ;;  %p640_p10 = scmp.ne.s32.totalorder %s860_s5, %s639_s11  ;;  %s62_s28 = int_to_ptr.vmem [resolvable:$true] %s61_s28 }
  0x36   :  { %p643_p11 = scmp.lt.u32.totalorder %s639_s11, %s860_s5 }
  0x38   :  { %p645_p12 = pnand %p643_p11, %p640_p10 }
  0x3a   :  { %648 = shalt.err (!%p645_p12)
}
  0x3b   :  { %s649_s14 = scalar_lea.vmem %s62_s28, 2048  ;;  %p654_p0 = scmp.lt.s32.totalorder %s62_s28, %s62_s28 }
  0x3c   :  { %p650_p13 = scmp.ne.s32.totalorder %s62_s28, %s649_s14  ;;  %p655_p1 = scmp.lt.s32.totalorder %s649_s14, %s649_s14 }
  0x3e   :  { %p656_p2 = por %p655_p1, %p654_p0 }
  0x40   :  { %p657_p3 = pnand %p656_p2, %p650_p13 }
  0x42   :  { %660 = shalt.err (!%p657_p3)
}
  0x43   :  { %67 = dma.hbm_to_vmem [thread:$0]  %s860_s5, 2048, %s62_s28, [#allocation9], %s692_s19, %s692_s19, %s693_s20  }
  0x44   :  { %683 = dma.done.wait [#allocation3], 128  }
  0x45   :  { %684 = vsyncadd [#allocation3], 4294967168 }
  0x46   :  { %685 = dma.done.wait [#allocation6], 2304  }
  0x47   :  { %686 = vsyncadd [#allocation6], 4294964992 }
  0x48   :  { %687 = dma.done.wait [#allocation9], 2048  }
  0x49   :  { %688 = vsyncadd [#allocation9], 4294965248  ;;  %v697_v0 = vmov 0.0|0.0   ;;  %vm698_vm0 = vmmov 0   ;;  %v699_v1 = vmov 0.0   ;;  %v87_v2 = vld [vmem:[#allocation5] sm:$0xff] }
  0x4a   :  { %512 = vmatprep.subr.bf16.mxu0 %v697_v0  ;;  %439 = vmatprep.mubr.msk.f32.mxu0 %vm698_vm0, %v699_v1  ;;  %v88_v3 = vld [vmem:[#allocation5 + $0x8] sm:$0xff]  ;;  %v171_v5 = vld [vmem:[#allocation7] sm:$0xff]  ;;  %v172_v6 = vld [vmem:[#allocation7 + $0x8] sm:$0xff]  ;;  %vm96_vm1 = vcmask 130048  }
  0x4b   :  { %515 = vmatprep.subr.bf16.mxu1 %v697_v0  ;;  %474 = vmatprep.mubr.msk.f32.mxu1 %vm698_vm0, %v699_v1  ;;  %v513_v4 = vpack.c.bf16 %v88_v3, %v87_v2  ;;  %v173_v7 = vld [vmem:[#allocation7 + $0x10] sm:$0xff]  ;;  %v516_v8 = vpack.c.bf16 %v172_v6, %v171_v5  ;;  %v174_v9 = vld [vmem:[#allocation7 + $0x18] sm:$0xff]  ;;  %v86_v10 = vld [vmem:[#allocation2] sm:$0xff] }
  0x4c   :  { %v519_v11 = vpack.c.bf16 %v174_v9, %v173_v7  ;;  %v175_v12 = vld [vmem:[#allocation7 + $0x20] sm:$0xff]  ;;  %v176_v13 = vld [vmem:[#allocation7 + $0x28] sm:$0xff]  ;;  %v177_v15 = vld [vmem:[#allocation7 + $0x30] sm:$0xff] }
  0x4d   :  { %514 = vmatpush3.bf16.msra.mxu0 %v513_v4  ;;  %517 = vmatpush3.bf16.msra.mxu1 %v516_v8  ;;  %v522_v14 = vpack.c.bf16 %v176_v13, %v175_v12  ;;  %v178_v16 = vld [vmem:[#allocation7 + $0x38] sm:$0xff]  ;;  %v179_v18 = vld [vmem:[#allocation7 + $0x40] sm:$0xff]  ;;  %v180_v19 = vld [vmem:[#allocation7 + $0x48] sm:$0xff] }
  0x4e   :  { %539 = vmatprep.subr.bf16.mxu0 %v697_v0  ;;  %518 = vmatprep.subr.bf16.mxu1 %v697_v0  ;;  %v525_v17 = vpack.c.bf16 %v178_v16, %v177_v15  ;;  %v528_v20 = vpack.c.bf16 %v180_v19, %v179_v18  ;;  %v181_v21 = vld [vmem:[#allocation7 + $0x50] sm:$0xff]  ;;  %v182_v22 = vld [vmem:[#allocation7 + $0x58] sm:$0xff]  ;;  %v183_v24 = vld [vmem:[#allocation7 + $0x60] sm:$0xff] }
  0x4f   :  { %v531_v23 = vpack.c.bf16 %v182_v22, %v181_v21  ;;  %v184_v25 = vld [vmem:[#allocation7 + $0x68] sm:$0xff]  ;;  %v185_v27 = vld [vmem:[#allocation7 + $0x70] sm:$0xff]  ;;  %v186_v28 = vld [vmem:[#allocation7 + $0x78] sm:$0xff] }
  0x50   :  { %440 = vmatmul.mubr.msk.f32.vlgmr.msra.gmra.mrb[0].mxu0 %vm96_vm1, %v86_v10  ;;  %v534_v26 = vpack.c.bf16 %v184_v25, %v183_v24  ;;  %v537_v29 = vpack.c.bf16 %v186_v28, %v185_v27  ;;  %v265_v30 = vld [vmem:[#allocation8] sm:$0xff]  ;;  %v266_v31 = vld [vmem:[#allocation8 + $0x8] sm:$0xff]  ;;  %v267_v32 = vld [vmem:[#allocation8 + $0x10] sm:$0xff] }
  0x51   :  { %509 = vmatprep.mubr.msk.f32.mxu0 %vm698_vm0, %v699_v1  ;;  %520 = vmatpush3.bf16.msra.mxu1 %v519_v11  ;;  %v540_v33 = vpack.c.bf16 %v266_v31, %v265_v30  ;;  %v268_v34 = vld [vmem:[#allocation8 + $0x18] sm:$0xff]  ;;  %v269_v36 = vld [vmem:[#allocation8 + $0x20] sm:$0xff]  ;;  %v270_v37 = vld [vmem:[#allocation8 + $0x28] sm:$0xff] }
  0x52   :  { %521 = vmatprep.subr.bf16.mxu1 %v697_v0  ;;  %v543_v35 = vpack.c.bf16 %v268_v34, %v267_v32  ;;  %v546_v38 = vpack.c.bf16 %v270_v37, %v269_v36  ;;  %v271_v39 = vld [vmem:[#allocation8 + $0x30] sm:$0xff]  ;;  %v272_v40 = vld [vmem:[#allocation8 + $0x38] sm:$0xff]  ;;  %v273_v42 = vld [vmem:[#allocation8 + $0x40] sm:$0xff] }
  0x53   :  { %541 = vmatpush3.bf16.msra.mxu0 %v540_v33  ;;  %v549_v41 = vpack.c.bf16 %v272_v40, %v271_v39  ;;  %v274_v43 = vld [vmem:[#allocation8 + $0x48] sm:$0xff]  ;;  %v275_v45 = vld [vmem:[#allocation8 + $0x50] sm:$0xff]  ;;  %v276_v46 = vld [vmem:[#allocation8 + $0x58] sm:$0xff] }
  0x54   :  { %542 = vmatprep.subr.bf16.mxu0 %v697_v0  ;;  %v552_v44 = vpack.c.bf16 %v274_v43, %v273_v42  ;;  %v555_v47 = vpack.c.bf16 %v276_v46, %v275_v45  ;;  %v277_v48 = vld [vmem:[#allocation8 + $0x60] sm:$0xff]  ;;  %v278_v49 = vld [vmem:[#allocation8 + $0x68] sm:$0xff]  ;;  %v279_v56 = vld [vmem:[#allocation8 + $0x70] sm:$0xff] }
  0x55   :  { %523 = vmatpush3.bf16.msra.mxu1 %v522_v14  ;;  %v558_v50 = vpack.c.bf16 %v278_v49, %v277_v48  ;;  %v392_v51 = vld [vmem:[%s857_s2] ss:$0 sm:$0xff]  ;;  %v280_v57 = vld [vmem:[#allocation8 + $0x78] sm:$0xff] }
  0x56   :  { %524 = vmatprep.subr.bf16.mxu1 %v697_v0  ;;  %v561_v58 = vpack.c.bf16 %v280_v57, %v279_v56  ;;  %v394_v59 = vld [vmem:[%s859_s4] ss:$0 sm:$0xff]  ;;  %s700_s4 = smov [#allocation10]  }
  0x57   :  { %544 = vmatpush3.bf16.msra.mxu0 %v543_v35  ;;  %v396_v2 = vld [vmem:[%s862_s7] ss:$0 sm:$0xff]  ;;  %s381_s23 = sshll.u32 %s700_s4, 4  ;;  %s382_s23 = int_to_ptr.vmem [resolvable:$true] %s381_s23 }
  0x58   :  { %545 = vmatprep.subr.bf16.mxu0 %v697_v0  ;;  %v397_v5 = vld [vmem:[%s863_s8] ss:$0 sm:$0xff]  ;;  %s661_s25 = scalar_lea.vmem %s382_s23, 128  ;;  %p666_p5 = scmp.lt.s32.totalorder %s382_s23, %s382_s23 }
  0x59   :  { %526 = vmatpush3.bf16.msra.mxu1 %v525_v17  ;;  %p662_p4 = scmp.ne.s32.totalorder %s382_s23, %s661_s25  ;;  %p667_p6 = scmp.lt.s32.totalorder %s661_s25, %s661_s25 }
  0x5a   :  { %527 = vmatprep.subr.bf16.mxu1 %v697_v0 }
  0x5b   :  { %547 = vmatpush3.bf16.msra.mxu0 %v546_v38  ;;  %p668_p7 = por %p667_p6, %p666_p5 }
  0x5c   :  { %548 = vmatprep.subr.bf16.mxu0 %v697_v0 }
  0x5d   :  { %529 = vmatpush3.bf16.msra.mxu1 %v528_v20  ;;  %p669_p8 = pnand %p668_p7, %p662_p4 }
  0x5e   :  { %530 = vmatprep.subr.bf16.mxu1 %v697_v0 }
  0x5f   :  { %550 = vmatpush3.bf16.msra.mxu0 %v549_v41 }
  0x60   :  { %551 = vmatprep.subr.bf16.mxu0 %v697_v0 }
  0x61   :  { %532 = vmatpush3.bf16.msra.mxu1 %v531_v23 }
  0x62   :  { %533 = vmatprep.subr.bf16.mxu1 %v697_v0 }
  0x63   :  { %553 = vmatpush3.bf16.msra.mxu0 %v552_v44 }
  0x64   :  { %554 = vmatprep.subr.bf16.mxu0 %v697_v0 }
  0x65   :  { %535 = vmatpush3.bf16.msra.mxu1 %v534_v26 }
  0x66   :  { %536 = vmatprep.subr.bf16.mxu1 %v697_v0 }
  0x67   :  { %556 = vmatpush3.bf16.msra.mxu0 %v555_v47 }
  0x68   :  { %557 = vmatprep.subr.bf16.mxu0 %v697_v0 }
  0x69   :  { %538 = vmatpush3.bf16.msra.mxu1 %v537_v29 }
  0x6b   :  { %559 = vmatpush3.bf16.msra.mxu0 %v558_v50 }
  0x6c   :  { %560 = vmatprep.subr.bf16.mxu0 %v697_v0  ;;  %v395_v0 = vld [vmem:[%s861_s6] ss:$0 sm:$0xff] }
  0x6f   :  { %562 = vmatpush3.bf16.msra.mxu0 %v561_v58 }
 0x123   :  { %v166_v52 = vpop.f32.mrb[0].mxu0 }
 0x124   :  { %v167_v53 = vadd.f32 %v392_v51, %v166_v52  ;;  %v441_v54 = vpop.f32.mrb[1].mxu0 }
 0x126   :  { %v170_v55 = vmax.f32 %v167_v53, 0.0 }
 0x128   :  { %475 = vmatmul.mubr.f32.vlgmr.msra.gmra.mrb[0].mxu1 %v170_v55 }
 0x1fb   :  { %v260_v60 = vpop.f32.mrb[0].mxu1 }
 0x1fc   :  { %v261_v61 = vadd.f32 %v394_v59, %v260_v60  ;;  %v476_v62 = vpop.f32.mrb[1].mxu1 }
 0x1fe   :  { %v264_v63 = vmax.f32 %v261_v61, 0.0 }
 0x200   :  { %510 = vmatmul.mubr.f32.vlgmr.msra.gmra.mrb[2].mxu0 %v264_v63 }
 0x2d3   :  { %v354_v1 = vpop.f32.mrb[2].mxu0 }
 0x2d4   :  { %v355_v3 = vadd.f32 %v395_v0, %v354_v1  ;;  %v511_v4 = vpop.f32.mrb[3].mxu0 }
 0x2d6   :  { %v366_v6 = vmax.f32 %v396_v2, %v355_v3 }
 0x2d8   :  { %v373_v7 = vmin.f32 %v397_v5, %v366_v6 }
 0x2da   :  { %374 = vst [vmem:[#allocation10] sm:$0xff] %v373_v7 }
 0x2db   :  { %672 = shalt.err (!%p669_p8)
}
 0x2dc   :  { %s673_s0 = scalar_lea.hbm %s864_s9, 128 }
 0x2dd   :  { %p674_p9 = scmp.ne.s32.totalorder %s864_s9, %s673_s0  ;;  %p677_p10 = scmp.lt.u32.totalorder %s673_s0, %s864_s9 }
 0x2df   :  { %p679_p11 = pnand %p677_p10, %p674_p9 }
 0x2e1   :  { %682 = shalt.err (!%p679_p11)
}
 0x2e2   :  { %384 = dma.vmem_to_hbm [thread:$0]  %s382_s23, 128, %s864_s9, [#allocation4]  }
 0x2e3   :  { %689 = dma.done.wait [#allocation4], 128  }
 0x2e4   :  { %690 = vsyncadd [#allocation4], 4294967168 }
 0x2e5   :  { %388 = vsyncpa [#allocation3], 1 }
 0x2e6   :  { %389 = vsyncpa [#allocation6], 1 }
 0x2e7   :  { %390 = vsyncpa [#allocation9], 1 }
 0x2e8   :  { %391 = vsyncpa [#allocation4], 1 }

</bundles_post_ra>
